<compile_context>
chip_gen: v7x
topology: tpu7x:2x2x1
jax: 0.10.0
libtpu: 0.0.40
codegen_flags: <defaults>
</compile_context>

<pallas_src>
import math

import jax
import jax.numpy as jnp
from jax.experimental import pallas as pl
from jax.experimental.pallas import tpu as pltpu

_SUBLANE = 8              # f32 sublane tile (second-to-last dim)
_HALF_LANE = 64           # out_dim rounded to this -> slab (2*half) is a 128 multiple
_MIN_ROWS_PER_CORE = 256  # below this, splitting the grid is pure overhead


def _round_up(n: int, m: int) -> int:
    return ((n + m - 1) // m) * m


def _cdiv(a: int, b: int) -> int:
    return (a + b - 1) // b


def _actor_kernel_factory(k_scale: float, k_bias: float, half: int, compute_dtype):
    """Builds the fused MLP-actor kernel with static action-bound constants."""

    def kernel(x_ref, w1_ref, b1_ref, w2_ref, b2_ref, w3_ref, b3_ref, out_ref):
        x = x_ref[...].astype(compute_dtype)

        # Layer 1: Linear + ReLU  (MXU matmul, f32 accumulate)
        h1 = jnp.dot(x, w1_ref[...], preferred_element_type=jnp.float32) + b1_ref[...]
        h1 = jnp.maximum(h1, 0.0).astype(compute_dtype)

        # Layer 2: Linear + ReLU
        h2 = jnp.dot(h1, w2_ref[...], preferred_element_type=jnp.float32) + b2_ref[...]
        h2 = jnp.maximum(h2, 0.0).astype(compute_dtype)

        # Layer 3: Linear -> logits (padded output columns are zero, inert)
        logits = jnp.dot(h2, w3_ref[...], preferred_element_type=jnp.float32) + b3_ref[...]

        # Bounded action: k * tanh(logits) + bias   (EUP tanh, VPU mul/add)
        action = k_scale * jnp.tanh(logits) + k_bias

        # Two direct sliced stores into the lane-dense slab (no concat copy).
        out_ref[:, :half] = action.astype(out_ref.dtype)
        out_ref[:, half:] = logits.astype(out_ref.dtype)

    return kernel


def prepare_actor_params(params, *, compute_dtype=jnp.float32):
    """One-time parameter prep (hoisted out of the per-forward-call path).

    Only W3/b3 have their output dim padded (so the packed action|logits slab
    stays a single 128-lane-multiple block); everything else keeps its natural
    size.  Pass compute_dtype=jnp.bfloat16 for ~3x MXU throughput on v6e/v7x
    in the compute-bound regime (costs ~1e-3 precision in the outputs).
    """
    out_dim = params["w3"].shape[1]
    half = _round_up(out_dim, _HALF_LANE)
    pad_cols = half - out_dim
    w3 = jnp.pad(params["w3"], ((0, 0), (0, pad_cols)))
    b3 = jnp.pad(params["b3"], ((0, 0), (0, pad_cols)))
    return {
        "w1": params["w1"].astype(compute_dtype),
        "b1": params["b1"].astype(jnp.float32),
        "w2": params["w2"].astype(compute_dtype),
        "b2": params["b2"].astype(jnp.float32),
        "w3": w3.astype(compute_dtype),
        "b3": b3.astype(jnp.float32),
        "compute_dtype": compute_dtype,
        "out_dim": out_dim,
    }


def mlp_actor_forward(x, prepped, action_bound, *, batch_block=1024):
    """Runs the fused actor MLP in one pallas_call.

    x:        [batch, in_dim] float32
    prepped:  output of prepare_actor_params()
    returns:  (action [batch, out_dim], logits [batch, out_dim])
    """
    a_min, a_max = action_bound
    k_scale = float((a_max - a_min) / 2.0)
    k_bias = float((a_max + a_min) / 2.0)

    out_dim = prepped["out_dim"]
    compute_dtype = prepped["compute_dtype"]
    w1, b1 = prepped["w1"], prepped["b1"]
    w2, b2 = prepped["w2"], prepped["b2"]
    w3, b3 = prepped["w3"], prepped["b3"]

    batch, in_dim = x.shape
    hidden_dim = w1.shape[1]
    half = w3.shape[1]          # out_dim rounded up to 64
    slab_lanes = 2 * half       # [action_pad | logits_pad], multiple of 128

    # --- batch tiling ----------------------------------------------------
    batch_8 = _round_up(batch, _SUBLANE)
    num_tiles = max(1, _cdiv(batch_8, batch_block))
    # Keep both TensorCores busy on v7x once the batch is large enough.
    if batch_8 >= 2 * _MIN_ROWS_PER_CORE:
        num_tiles = max(num_tiles, 2)
    tb = _round_up(_cdiv(batch_8, num_tiles), _SUBLANE)
    grid_n = _cdiv(batch_8, tb)
    batch_p = grid_n * tb

    x_p = jnp.pad(x, ((0, batch_p - batch), (0, 0))) if batch_p != batch else x

    kernel = _actor_kernel_factory(k_scale, k_bias, half, compute_dtype)

    # Weights/biases stay resident in VMEM (constant block index across grid).
    # (pl.Buffered(1) on these specs would save the ~0.2 MiB duplicate buffers;
    #  left at the default buffering since the saving is negligible here.)
    def resident(a):
        return pl.BlockSpec(a.shape, lambda i: (0, 0))

    w_itemsize = jnp.dtype(compute_dtype).itemsize
    flops = 2 * batch_p * hidden_dim * (in_dim + hidden_dim + half)
    bytes_accessed = (
        x_p.size * x_p.dtype.itemsize
        + (w1.size + w2.size + w3.size) * w_itemsize
        + (b1.size + b2.size + b3.size) * 4
        + batch_p * slab_lanes * 4
    )
    cost = pl.CostEstimate(flops=flops,
                           transcendentals=batch_p * half,
                           bytes_accessed=bytes_accessed)

    slab = pl.pallas_call(
        kernel,
        out_shape=jax.ShapeDtypeStruct((batch_p, slab_lanes), jnp.float32),
        grid=(grid_n,),
        in_specs=[
            pl.BlockSpec((tb, in_dim), lambda i: (i, 0)),   # x: natural feature width
            resident(w1), resident(b1),
            resident(w2), resident(b2),
            resident(w3), resident(b3),
        ],
        out_specs=pl.BlockSpec((tb, slab_lanes), lambda i: (i, 0)),
        compiler_params=pltpu.CompilerParams(
            dimension_semantics=("parallel",)),
        cost_estimate=cost,
    )(x_p, w1, b1, w2, b2, w3, b3)

    action = slab[:batch, :out_dim]
    logits = slab[:batch, half:half + out_dim]
    return action, logits


def init_actor_params(key, in_dim, hidden_dim, out_dim):
    """Deterministic init matching the PyTorch module:
    xavier_uniform_(weight, gain=calculate_gain('relu')) and bias = 0.01."""
    gain = math.sqrt(2.0)  # nn.init.calculate_gain('relu')

    def xavier_uniform(k, fan_in, fan_out):
        bound = gain * math.sqrt(6.0 / (fan_in + fan_out))
        # stored as [fan_in, fan_out] so the kernel does x @ W
        return jax.random.uniform(k, (fan_in, fan_out), jnp.float32,
                                  minval=-bound, maxval=bound)

    k1, k2, k3 = jax.random.split(key, 3)
    return {
        "w1": xavier_uniform(k1, in_dim, hidden_dim),
        "b1": jnp.full((1, hidden_dim), 0.01, jnp.float32),
        "w2": xavier_uniform(k2, hidden_dim, hidden_dim),
        "b2": jnp.full((1, hidden_dim), 0.01, jnp.float32),
        "w3": xavier_uniform(k3, hidden_dim, out_dim),
        "b3": jnp.full((1, out_dim), 0.01, jnp.float32),
    }


if __name__ == "__main__":
    # Small shapes consistent with an MADDPG actor MLP.
    batch, in_dim, hidden_dim, out_dim = 8, 16, 64, 4
    action_bound = (-1.0, 1.0)

    key = jax.random.PRNGKey(0)
    k_params, k_x = jax.random.split(key)

    params = init_actor_params(k_params, in_dim, hidden_dim, out_dim)
    prepped = prepare_actor_params(params)          # one-time param prep (hoisted)
    x = jax.random.normal(k_x, (batch, in_dim), jnp.float32)

    action, logits = mlp_actor_forward(x, prepped, action_bound)
    jax.block_until_ready((action, logits))

    # Pure-JAX reference of the same semantics.
    h1 = jnp.maximum(x @ params["w1"] + params["b1"], 0.0)
    h2 = jnp.maximum(h1 @ params["w2"] + params["b2"], 0.0)
    logits_ref = h2 @ params["w3"] + params["b3"]
    k_s = (action_bound[1] - action_bound[0]) / 2.0
    k_b = (action_bound[1] + action_bound[0]) / 2.0
    action_ref = k_s * jnp.tanh(logits_ref) + k_b

    assert action.shape == (batch, out_dim) and logits.shape == (batch, out_dim)
    assert jnp.allclose(logits, logits_ref, atol=1e-5), "logits mismatch"
    assert jnp.allclose(action, action_ref, atol=1e-5), "action mismatch"

    print("KERNEL_OK")
</pallas_src>

<mosaic_0001>
module attributes {stable_mosaic.version = 11 : i64} {
  func.func @kernel(%arg0: i32, %arg1: memref<8x16xf32, #tpu.memory_space<vmem>>, %arg2: memref<16x64xf32, #tpu.memory_space<vmem>>, %arg3: memref<1x64xf32, #tpu.memory_space<vmem>>, %arg4: memref<64x64xf32, #tpu.memory_space<vmem>>, %arg5: memref<1x64xf32, #tpu.memory_space<vmem>>, %arg6: memref<64x64xf32, #tpu.memory_space<vmem>>, %arg7: memref<1x64xf32, #tpu.memory_space<vmem>>, %arg8: memref<8x128xf32, #tpu.memory_space<vmem>>) attributes {dimension_semantics = [#tpu.dimension_semantics<parallel>], iteration_bounds = array<i64: 1>, scalar_prefetch = 0 : i64, scratch_operands = 0 : i64, tpu.core_type = #tpu.core_type<tc>, window_params = [{transform_indices = @transform_0, window_bounds = array<i64: 8, 16>}, {pipeline_mode = #tpu.pipeline_mode<synchronous>, transform_indices = @transform_1, window_bounds = array<i64: 16, 64>}, {pipeline_mode = #tpu.pipeline_mode<synchronous>, transform_indices = @transform_2, window_bounds = array<i64: 1, 64>}, {pipeline_mode = #tpu.pipeline_mode<synchronous>, transform_indices = @transform_3, window_bounds = array<i64: 64, 64>}, {pipeline_mode = #tpu.pipeline_mode<synchronous>, transform_indices = @transform_4, window_bounds = array<i64: 1, 64>}, {pipeline_mode = #tpu.pipeline_mode<synchronous>, transform_indices = @transform_5, window_bounds = array<i64: 64, 64>}, {pipeline_mode = #tpu.pipeline_mode<synchronous>, transform_indices = @transform_6, window_bounds = array<i64: 1, 64>}, {transform_indices = @transform_7, window_bounds = array<i64: 8, 128>}]} {
    %c0 = arith.constant 0 : index
    %c0_0 = arith.constant 0 : index
    %0 = vector.load %arg1[%c0, %c0_0] : memref<8x16xf32, #tpu.memory_space<vmem>>, vector<8x16xf32>
    %c0_1 = arith.constant 0 : index
    %c0_2 = arith.constant 0 : index
    %1 = vector.load %arg2[%c0_1, %c0_2] : memref<16x64xf32, #tpu.memory_space<vmem>>, vector<16x64xf32>
    %cst = arith.constant dense<0.000000e+00> : vector<8x64xf32>
    %2 = tpu.matmul %0, %1, %cst {dimension_numbers = #tpu.dot_dimension_numbers<[1], [0], [0], [1], [0, 0, 1, 1], [], []>} : vector<8x16xf32>, vector<16x64xf32>, vector<8x64xf32> -> vector<8x64xf32>
    %c0_3 = arith.constant 0 : index
    %c0_4 = arith.constant 0 : index
    %3 = vector.load %arg3[%c0_3, %c0_4] : memref<1x64xf32, #tpu.memory_space<vmem>>, vector<1x64xf32>
    %4 = vector.broadcast %3 : vector<1x64xf32> to vector<8x64xf32>
    %5 = arith.addf %2, %4 : vector<8x64xf32>
    %cst_5 = arith.constant 0.000000e+00 : f32
    %6 = vector.broadcast %cst_5 : f32 to vector<8x64xf32>
    %7 = arith.maximumf %5, %6 : vector<8x64xf32>
    %c0_6 = arith.constant 0 : index
    %c0_7 = arith.constant 0 : index
    %8 = vector.load %arg4[%c0_6, %c0_7] : memref<64x64xf32, #tpu.memory_space<vmem>>, vector<64x64xf32>
    %cst_8 = arith.constant dense<0.000000e+00> : vector<8x64xf32>
    %9 = tpu.matmul %7, %8, %cst_8 {dimension_numbers = #tpu.dot_dimension_numbers<[1], [0], [0], [1], [0, 0, 1, 1], [], []>} : vector<8x64xf32>, vector<64x64xf32>, vector<8x64xf32> -> vector<8x64xf32>
    %c0_9 = arith.constant 0 : index
    %c0_10 = arith.constant 0 : index
    %10 = vector.load %arg5[%c0_9, %c0_10] : memref<1x64xf32, #tpu.memory_space<vmem>>, vector<1x64xf32>
    %11 = vector.broadcast %10 : vector<1x64xf32> to vector<8x64xf32>
    %12 = arith.addf %9, %11 : vector<8x64xf32>
    %cst_11 = arith.constant 0.000000e+00 : f32
    %13 = vector.broadcast %cst_11 : f32 to vector<8x64xf32>
    %14 = arith.maximumf %12, %13 : vector<8x64xf32>
    %c0_12 = arith.constant 0 : index
    %c0_13 = arith.constant 0 : index
    %15 = vector.load %arg6[%c0_12, %c0_13] : memref<64x64xf32, #tpu.memory_space<vmem>>, vector<64x64xf32>
    %cst_14 = arith.constant dense<0.000000e+00> : vector<8x64xf32>
    %16 = tpu.matmul %14, %15, %cst_14 {dimension_numbers = #tpu.dot_dimension_numbers<[1], [0], [0], [1], [0, 0, 1, 1], [], []>} : vector<8x64xf32>, vector<64x64xf32>, vector<8x64xf32> -> vector<8x64xf32>
    %c0_15 = arith.constant 0 : index
    %c0_16 = arith.constant 0 : index
    %17 = vector.load %arg7[%c0_15, %c0_16] : memref<1x64xf32, #tpu.memory_space<vmem>>, vector<1x64xf32>
    %18 = vector.broadcast %17 : vector<1x64xf32> to vector<8x64xf32>
    %19 = arith.addf %16, %18 : vector<8x64xf32>
    %20 = math.tanh %19 : vector<8x64xf32>
    %cst_17 = arith.constant 1.000000e+00 : f32
    %21 = vector.broadcast %cst_17 : f32 to vector<8x64xf32>
    %22 = arith.mulf %21, %20 : vector<8x64xf32>
    %cst_18 = arith.constant 0.000000e+00 : f32
    %23 = vector.broadcast %cst_18 : f32 to vector<8x64xf32>
    %24 = arith.addf %22, %23 : vector<8x64xf32>
    %c0_19 = arith.constant 0 : index
    %c0_20 = arith.constant 0 : index
    %25 = vector.load %arg8[%c0_19, %c0_20] : memref<8x128xf32, #tpu.memory_space<vmem>>, vector<8x64xf32>
    tpu.vector_store %arg8[%c0_19, %c0_20], %24 {strides = array<i32>} : memref<8x128xf32, #tpu.memory_space<vmem>>, vector<8x64xf32>,
    %c0_21 = arith.constant 0 : index
    %c64 = arith.constant 64 : index
    %26 = vector.load %arg8[%c0_21, %c64] : memref<8x128xf32, #tpu.memory_space<vmem>>, vector<8x64xf32>
    tpu.vector_store %arg8[%c0_21, %c64], %19 {strides = array<i32>} : memref<8x128xf32, #tpu.memory_space<vmem>>, vector<8x64xf32>,
    return
  }
  func.func @transform_0(%arg0: i32) -> (i32, i32) {
    %c0_i32 = arith.constant 0 : i32
    %c0_i32_0 = arith.constant 0 : i32
    return %arg0, %c0_i32 : i32, i32
  }
  func.func @transform_1(%arg0: i32) -> (i32, i32) {
    %c0_i32 = arith.constant 0 : i32
    %c0_i32_0 = arith.constant 0 : i32
    %c0_i32_1 = arith.constant 0 : i32
    return %c0_i32, %c0_i32_0 : i32, i32
  }
  func.func @transform_2(%arg0: i32) -> (i32, i32) {
    %c0_i32 = arith.constant 0 : i32
    %c0_i32_0 = arith.constant 0 : i32
    %c0_i32_1 = arith.constant 0 : i32
    return %c0_i32, %c0_i32_0 : i32, i32
  }
  func.func @transform_3(%arg0: i32) -> (i32, i32) {
    %c0_i32 = arith.constant 0 : i32
    %c0_i32_0 = arith.constant 0 : i32
    %c0_i32_1 = arith.constant 0 : i32
    return %c0_i32, %c0_i32_0 : i32, i32
  }
  func.func @transform_4(%arg0: i32) -> (i32, i32) {
    %c0_i32 = arith.constant 0 : i32
    %c0_i32_0 = arith.constant 0 : i32
    %c0_i32_1 = arith.constant 0 : i32
    return %c0_i32, %c0_i32_0 : i32, i32
  }
  func.func @transform_5(%arg0: i32) -> (i32, i32) {
    %c0_i32 = arith.constant 0 : i32
    %c0_i32_0 = arith.constant 0 : i32
    %c0_i32_1 = arith.constant 0 : i32
    return %c0_i32, %c0_i32_0 : i32, i32
  }
  func.func @transform_6(%arg0: i32) -> (i32, i32) {
    %c0_i32 = arith.constant 0 : i32
    %c0_i32_0 = arith.constant 0 : i32
    %c0_i32_1 = arith.constant 0 : i32
    return %c0_i32, %c0_i32_0 : i32, i32
  }
  func.func @transform_7(%arg0: i32) -> (i32, i32) {
    %c0_i32 = arith.constant 0 : i32
    %c0_i32_0 = arith.constant 0 : i32
    return %arg0, %c0_i32 : i32, i32
  }
}

</mosaic_0001>

<bundles_post_ra>
// kernel: tpu_custom_call.1
= control target key start
LH: loop header
LB: loop body
LE: loop exit
PB: predicated region body
PF: predicated region fallthrough
CT: control target
= control target key end

     0   :  { %12 = vsyncpa [#allocation3], 0  ;;  %s734_s0 = inlined_call_operand.hbm [shape: f32[8,16], index: 0, kind: input, shape index: {}]   ;;  %s735_s1 = inlined_call_operand.hbm [shape: f32[16,64], index: 1, kind: input, shape index: {}]   ;;  %s736_s2 = inlined_call_operand.vmem [shape: f32[1,64], index: 2, kind: input, shape index: {}]   ;;  %s737_s3 = inlined_call_operand.hbm [shape: f32[64,64], index: 3, kind: input, shape index: {}]   ;;  %s738_s4 = inlined_call_operand.vmem [shape: f32[1,64], index: 4, kind: input, shape index: {}]   ;;  %s739_s5 = inlined_call_operand.hbm [shape: f32[64,64], index: 5, kind: input, shape index: {}]   ;;  %s740_s6 = inlined_call_operand.vmem [shape: f32[1,64], index: 6, kind: input, shape index: {}]   ;;  %s741_s7 = inlined_call_operand.hbm [shape: f32[8,128], index: 7, kind: output, shape index: {}]  }
   0x1   :  { %13 = vsyncpa [#allocation6], 0 }
   0x2   :  { %14 = vsyncpa [#allocation9], 0 }
   0x3   :  { %15 = vsyncpa [#allocation4], 0  ;;  %s599_s24 = smov [#allocation5]   ;;  %s481_s28 = scalar_lea.hbm %s735_s1, 256 }
   0x4   :  { %s31_s25 = sshll.u32 %s599_s24, 4  ;;  %p482_p0 = scmp.ne.s32.totalorder %s735_s1, %s481_s28  ;;  %s32_s25 = int_to_ptr.vmem [resolvable:$true] %s31_s25 }
   0x5   :  { %p485_p1 = scmp.lt.u32.totalorder %s481_s28, %s735_s1 }
   0x7   :  { %p487_p2 = pnand %p485_p1, %p482_p0 }
   0x9   :  { %490 = shalt.err (!%p487_p2)
}
   0xa   :  { %s491_s10 = scalar_lea.vmem %s32_s25, 256  ;;  %p496_p4 = scmp.lt.s32.totalorder %s32_s25, %s32_s25 }
   0xb   :  { %p492_p3 = scmp.ne.s32.totalorder %s32_s25, %s491_s10  ;;  %p497_p5 = scmp.lt.s32.totalorder %s491_s10, %s491_s10 }
   0xd   :  { %p498_p6 = por %p497_p5, %p496_p4 }
   0xf   :  { %p499_p7 = pnand %p498_p6, %p492_p3 }
  0x11   :  { %502 = shalt.err (!%p499_p7)
}
  0x12   :  { %s600_s11 = smov 128   ;;  %s601_s12 = smov 8  }
  0x13   :  { %37 = dma.hbm_to_vmem [thread:$0]  %s735_s1, 256, %s32_s25, [#allocation6], %s600_s11, %s600_s11, %s601_s12  }
  0x14   :  { %s602_s15 = smov [#allocation2]   ;;  %s603_s17 = smov [#allocation7]  }
  0x15   :  { %s22_s16 = sshll.u32 %s602_s15, 4  ;;  %s45_s18 = sshll.u32 %s603_s17, 4  ;;  %s23_s16 = int_to_ptr.vmem [resolvable:$true] %s22_s16  ;;  %s46_s18 = int_to_ptr.vmem [resolvable:$true] %s45_s18 }
  0x16   :  { %s503_s21 = scalar_lea.hbm %s734_s0, 128 }
  0x17   :  { %p504_p8 = scmp.ne.s32.totalorder %s734_s0, %s503_s21  ;;  %p507_p9 = scmp.lt.u32.totalorder %s503_s21, %s734_s0 }
  0x19   :  { %p509_p10 = pnand %p507_p9, %p504_p8 }
  0x1b   :  { %512 = shalt.err (!%p509_p10)
}
  0x1c   :  { %s513_s1 = scalar_lea.vmem %s23_s16, 128  ;;  %p518_p12 = scmp.lt.s32.totalorder %s23_s16, %s23_s16 }
  0x1d   :  { %p514_p11 = scmp.ne.s32.totalorder %s23_s16, %s513_s1  ;;  %p519_p13 = scmp.lt.s32.totalorder %s513_s1, %s513_s1 }
  0x1f   :  { %p520_p0 = por %p519_p13, %p518_p12 }
  0x21   :  { %p521_p1 = pnand %p520_p0, %p514_p11 }
  0x23   :  { %524 = shalt.err (!%p521_p1)
}
  0x24   :  { %25 = dma.hbm_to_vmem [thread:$0]  %s734_s0, 128, %s23_s16, [#allocation3]  }
  0x25   :  { %s525_s30 = scalar_lea.hbm %s737_s3, 1024 }
  0x26   :  { %p526_p2 = scmp.ne.s32.totalorder %s737_s3, %s525_s30  ;;  %p529_p3 = scmp.lt.u32.totalorder %s525_s30, %s737_s3 }
  0x28   :  { %p531_p4 = pnand %p529_p3, %p526_p2 }
  0x2a   :  { %534 = shalt.err (!%p531_p4)
}
  0x2b   :  { %s535_s14 = scalar_lea.vmem %s46_s18, 1024  ;;  %p540_p6 = scmp.lt.s32.totalorder %s46_s18, %s46_s18 }
  0x2c   :  { %p536_p5 = scmp.ne.s32.totalorder %s46_s18, %s535_s14  ;;  %p541_p7 = scmp.lt.s32.totalorder %s535_s14, %s535_s14 }
  0x2e   :  { %p542_p8 = por %p541_p7, %p540_p6 }
  0x30   :  { %p543_p9 = pnand %p542_p8, %p536_p5 }
  0x32   :  { %546 = shalt.err (!%p543_p9)
}
  0x33   :  { %51 = dma.hbm_to_vmem [thread:$0]  %s737_s3, 1024, %s46_s18, [#allocation6], %s600_s11, %s600_s11, %s601_s12  }
  0x34   :  { %s604_s16 = smov [#allocation8]   ;;  %s547_s21 = scalar_lea.hbm %s739_s5, 1024 }
  0x35   :  { %s59_s17 = sshll.u32 %s604_s16, 4  ;;  %p548_p10 = scmp.ne.s32.totalorder %s739_s5, %s547_s21  ;;  %s60_s17 = int_to_ptr.vmem [resolvable:$true] %s59_s17 }
  0x36   :  { %p551_p11 = scmp.lt.u32.totalorder %s547_s21, %s739_s5 }
  0x38   :  { %p553_p12 = pnand %p551_p11, %p548_p10 }
  0x3a   :  { %556 = shalt.err (!%p553_p12)
}
  0x3b   :  { %s557_s1 = scalar_lea.vmem %s60_s17, 1024  ;;  %p562_p0 = scmp.lt.s32.totalorder %s60_s17, %s60_s17 }
  0x3c   :  { %p558_p13 = scmp.ne.s32.totalorder %s60_s17, %s557_s1  ;;  %p563_p1 = scmp.lt.s32.totalorder %s557_s1, %s557_s1 }
  0x3e   :  { %p564_p2 = por %p563_p1, %p562_p0 }
  0x40   :  { %p565_p3 = pnand %p564_p2, %p558_p13 }
  0x42   :  { %568 = shalt.err (!%p565_p3)
}
  0x43   :  { %65 = dma.hbm_to_vmem [thread:$0]  %s739_s5, 1024, %s60_s17, [#allocation9], %s600_s11, %s600_s11, %s601_s12  }
  0x44   :  { %591 = dma.done.wait [#allocation3], 128  }
  0x45   :  { %592 = vsyncadd [#allocation3], 4294967168 }
  0x46   :  { %593 = dma.done.wait [#allocation6], 1280  }
  0x47   :  { %594 = vsyncadd [#allocation6], 4294966016 }
  0x48   :  { %595 = dma.done.wait [#allocation9], 1024  }
  0x49   :  { %596 = vsyncadd [#allocation9], 4294966272  ;;  %v605_v0 = vmov 0.0|0.0   ;;  %vm606_vm0 = vmmov 0   ;;  %v607_v1 = vmov 0.0   ;;  %v81_v2 = vld [vmem:[#allocation5] sm:$0xff] }
  0x4a   :  { %441 = vmatprep.subr.bf16.mxu0 %v605_v0  ;;  %400 = vmatprep.mubr.msk.f32.mxu0 %vm606_vm0, %v607_v1  ;;  %v82_v3 = vld [vmem:[#allocation5 + $0x8] sm:$0xff]  ;;  %v165_v5 = vld [vmem:[#allocation7] sm:$0xff]  ;;  %v166_v6 = vld [vmem:[#allocation7 + $0x8] sm:$0xff]  ;;  %vm90_vm1 = vcmask 130048   ;;  %vm180_vm2 = vcmask 523264   ;;  %s608_s28 = smov 64  }
  0x4b   :  { %444 = vmatprep.subr.bf16.mxu1 %v605_v0  ;;  %419 = vmatprep.mubr.msk.f32.mxu1 %vm606_vm0, %v607_v1  ;;  %v442_v4 = vpack.c.bf16 %v82_v3, %v81_v2  ;;  %v167_v7 = vld [vmem:[#allocation7 + $0x10] sm:$0xff]  ;;  %v445_v8 = vpack.c.bf16 %v166_v6, %v165_v5  ;;  %v168_v9 = vld [vmem:[#allocation7 + $0x18] sm:$0xff]  ;;  %v80_v10 = vld [vmem:[#allocation2] sm:$0xff]  ;;  %vm350_vm3 = vcmask 1048064  }
  0x4c   :  { %v448_v11 = vpack.c.bf16 %v168_v9, %v167_v7  ;;  %v169_v12 = vld [vmem:[#allocation7 + $0x20] sm:$0xff]  ;;  %v170_v13 = vld [vmem:[#allocation7 + $0x28] sm:$0xff]  ;;  %v171_v15 = vld [vmem:[#allocation7 + $0x30] sm:$0xff] }
  0x4d   :  { %443 = vmatpush3.bf16.msra.mxu0 %v442_v4  ;;  %446 = vmatpush3.bf16.msra.mxu1 %v445_v8  ;;  %v451_v14 = vpack.c.bf16 %v170_v13, %v169_v12  ;;  %v172_v16 = vld [vmem:[#allocation7 + $0x38] sm:$0xff]  ;;  %v255_v18 = vld [vmem:[#allocation8] sm:$0xff]  ;;  %v256_v19 = vld [vmem:[#allocation8 + $0x8] sm:$0xff] }
  0x4e   :  { %456 = vmatprep.subr.bf16.mxu0 %v605_v0  ;;  %447 = vmatprep.subr.bf16.mxu1 %v605_v0  ;;  %v454_v17 = vpack.c.bf16 %v172_v16, %v171_v15  ;;  %v257_v20 = vld [vmem:[#allocation8 + $0x10] sm:$0xff]  ;;  %v457_v21 = vpack.c.bf16 %v256_v19, %v255_v18  ;;  %v258_v22 = vld [vmem:[#allocation8 + $0x18] sm:$0xff]  ;;  %v259_v24 = vld [vmem:[#allocation8 + $0x20] sm:$0xff] }
  0x4f   :  { %v460_v23 = vpack.c.bf16 %v258_v22, %v257_v20  ;;  %v260_v25 = vld [vmem:[#allocation8 + $0x28] sm:$0xff]  ;;  %v261_v32 = vld [vmem:[#allocation8 + $0x30] sm:$0xff]  ;;  %v262_v33 = vld [vmem:[#allocation8 + $0x38] sm:$0xff] }
  0x50   :  { %401 = vmatmul.mubr.msk.f32.vlgmr.msra.gmra.mrb[0].mxu0 %vm90_vm1, %v80_v10  ;;  %v463_v26 = vpack.c.bf16 %v260_v25, %v259_v24  ;;  %v369_v27 = vld [vmem:[%s736_s2] ss:$0 sm:$0xff]  ;;  %v466_v34 = vpack.c.bf16 %v262_v33, %v261_v32 }
  0x51   :  { %438 = vmatprep.mubr.msk.f32.mxu0 %vm606_vm0, %v607_v1  ;;  %449 = vmatpush3.bf16.msra.mxu1 %v448_v11  ;;  %v371_v35 = vld [vmem:[%s738_s4] ss:$0 sm:$0xff]  ;;  %s609_s4 = smov [#allocation10]  }
  0x52   :  { %450 = vmatprep.subr.bf16.mxu1 %v605_v0  ;;  %458 = vmatpush3.bf16.msra.mxu0 %v457_v21  ;;  %v373_v40 = vld [vmem:[%s740_s6] ss:$0 sm:$0xff]  ;;  %s358_s29 = sshll.u32 %s609_s4, 4  ;;  %s359_s29 = int_to_ptr.vmem [resolvable:$true] %s358_s29 }
  0x53   :  { %459 = vmatprep.subr.bf16.mxu0 %v605_v0  ;;  %s569_s30 = scalar_lea.vmem %s359_s29, 128  ;;  %p574_p5 = scmp.lt.s32.totalorder %s359_s29, %s359_s29 }
  0x54   :  { %p570_p4 = scmp.ne.s32.totalorder %s359_s29, %s569_s30  ;;  %p575_p6 = scmp.lt.s32.totalorder %s569_s30, %s569_s30 }
  0x55   :  { %452 = vmatpush3.bf16.msra.mxu1 %v451_v14 }
  0x56   :  { %453 = vmatprep.subr.bf16.mxu1 %v605_v0  ;;  %461 = vmatpush3.bf16.msra.mxu0 %v460_v23  ;;  %p576_p7 = por %p575_p6, %p574_p5 }
  0x57   :  { %462 = vmatprep.subr.bf16.mxu0 %v605_v0 }
  0x58   :  { %p577_p8 = pnand %p576_p7, %p570_p4 }
  0x59   :  { %455 = vmatpush3.bf16.msra.mxu1 %v454_v17 }
  0x5a   :  { %464 = vmatpush3.bf16.msra.mxu0 %v463_v26 }
  0x5b   :  { %465 = vmatprep.subr.bf16.mxu0 %v605_v0 }
  0x5e   :  { %467 = vmatpush3.bf16.msra.mxu0 %v466_v34 }
 0x123   :  { %v160_v28 = vpop.f32.mrb[0].mxu0 }
 0x124   :  { %v161_v29 = vadd.f32 %v369_v27, %v160_v28  ;;  %v402_v30 = vpop.f32.mrb[1].mxu0 }
 0x126   :  { %v164_v31 = vmax.f32 %v161_v29, 0.0 }
 0x128   :  { %420 = vmatmul.mubr.msk.f32.vlgmr.msra.gmra.mrb[0].mxu1 %vm180_vm2, %v164_v31 }
 0x1fb   :  { %v250_v36 = vpop.f32.mrb[0].mxu1 }
 0x1fc   :  { %v251_v37 = vadd.f32 %v371_v35, %v250_v36  ;;  %v421_v38 = vpop.f32.mrb[1].mxu1 }
 0x1fe   :  { %v254_v39 = vmax.f32 %v251_v37, 0.0 }
 0x200   :  { %439 = vmatmul.mubr.msk.f32.vlgmr.msra.gmra.mrb[2].mxu0 %vm180_vm2, %v254_v39 }
 0x2d3   :  { %v339_v41 = vpop.f32.mrb[2].mxu0 }
 0x2d4   :  { %v340_v42 = vadd.f32 %v373_v40, %v339_v41  ;;  %v440_v43 = vpop.f32.mrb[3].mxu0 }
 0x2d6   :  { %479 = vtanh.f32 %v340_v42  ;;  %347 = vrot.lane.b32.xlu0 %v340_v42, %s608_s28 }
 0x2e0   :  { %v480_v44 = vpop.eup %479 }
 0x2e1   :  { %345 = vst.msk [vmem:[#allocation10] sm:$0xff] %vm180_vm2, %v480_v44 }
 0x348   :  { %v348_v45 = vpop.permute.xlu0 %347 }
 0x349   :  { %351 = vst.msk [vmem:[#allocation10] sm:$0xff] %vm350_vm3, %v348_v45 }
 0x34a   :  { %580 = shalt.err (!%p577_p8)
}
 0x34b   :  { %s581_s9 = scalar_lea.hbm %s741_s7, 128 }
 0x34c   :  { %p582_p9 = scmp.ne.s32.totalorder %s741_s7, %s581_s9  ;;  %p585_p10 = scmp.lt.u32.totalorder %s581_s9, %s741_s7 }
 0x34e   :  { %p587_p11 = pnand %p585_p10, %p582_p9 }
 0x350   :  { %590 = shalt.err (!%p587_p11)
}
 0x351   :  { %361 = dma.vmem_to_hbm [thread:$0]  %s359_s29, 128, %s741_s7, [#allocation4]  }
 0x352   :  { %597 = dma.done.wait [#allocation4], 128  }
 0x353   :  { %598 = vsyncadd [#allocation4], 4294967168 }
 0x354   :  { %365 = vsyncpa [#allocation3], 1 }
 0x355   :  { %366 = vsyncpa [#allocation6], 1 }
 0x356   :  { %367 = vsyncpa [#allocation9], 1 }
 0x357   :  { %368 = vsyncpa [#allocation4], 1 }

</bundles_post_ra>
